<compile_context>
chip_gen: v5e
topology: v5e:2x2
jax: 0.10.0
libtpu: 0.0.40
codegen_flags: <defaults>
</compile_context>

<pallas_src>
import jax
import jax.numpy as jnp
from jax.experimental import pallas as pl
from jax.experimental.pallas import tpu as pltpu

KSIZE = 5                                # 5x5 kernels, "valid" conv, stride 1
_INV_AREA = 1.0 / float(KSIZE * KSIZE)   # 1/25


def _make_std_loss_kernel(n_total, nb, n_chan, use_rolls):
    """Build the per-block kernel; all sizing is static and closed over."""
    kc = KSIZE // 2
    has_tail = (n_total % nb) != 0

    def kernel(x_ref, out_ref):
        # x_ref:   (nb, C, H, W) input block (native dtype)          [VMEM]
        # out_ref: (1, 1, 1) f32 partial sum of squared differences  [VMEM]

        # Grayscale: cast fused into the channel accumulate (per-plane f32);
        # `gray` is the channel *sum* — the 1/C is folded into the wrapper.
        gray = x_ref[:, 0].astype(jnp.float32)
        for ch in range(1, n_chan):
            gray = gray + x_ref[:, ch].astype(jnp.float32)

        h = gray.shape[1]
        w = gray.shape[2]
        ho = h - (KSIZE - 1)
        wo = w - (KSIZE - 1)

        if use_rolls:
            # Full-width taps on the XLU: every intermediate stays
            # lane-aligned; crop handled by one mask before the reduction.
            # roll(x, size - d) == jnp.roll(x, -d): result[i] = x[(i + d) % size].
            hsum = gray
            for dj in range(1, KSIZE):
                hsum = hsum + pltpu.roll(gray, w - dj, axis=2)
            box = hsum
            for di in range(1, KSIZE):
                box = box + pltpu.roll(hsum, h - di, axis=1)
            center = pltpu.roll(pltpu.roll(gray, w - kc, axis=2), h - kc, axis=1)
            diff = center - _INV_AREA * box
            row_ok = jax.lax.broadcasted_iota(jnp.int32, (h, w), 0) < ho
            col_ok = jax.lax.broadcasted_iota(jnp.int32, (h, w), 1) < wo
            mask = jnp.logical_and(row_ok, col_ok)[None, :, :]
        else:
            # Small / non-lane-aligned planes: plain static slices (robust).
            hsum = gray[:, :, 0:wo]
            for dj in range(1, KSIZE):
                hsum = hsum + gray[:, :, dj:dj + wo]
            box = hsum[:, 0:ho, :]
            for di in range(1, KSIZE):
                box = box + hsum[:, di:di + ho, :]
            center = gray[:, kc:kc + ho, kc:kc + wo]
            diff = center - _INV_AREA * box
            mask = None

        if has_tail:
            # The last grid block covers fewer than nb real images; mask the
            # padded batch rows (their VMEM contents are unspecified).
            left = n_total - pl.program_id(0) * nb
            bmask = jax.lax.broadcasted_iota(jnp.int32, (nb, 1, 1), 0) < left
            mask = bmask if mask is None else jnp.logical_and(mask, bmask)

        if mask is not None:
            diff = jnp.where(mask, diff, 0.0)

        d2 = diff * diff
        # Reduce the non-lane axes first; one cross-lane reduce per block.
        lane_partial = jnp.sum(d2, axis=(0, 1))
        out_ref[...] = jnp.sum(lane_partial).reshape(1, 1, 1)

    return kernel


def _vmem_budget():
    """(target input-tile bytes, vmem_limit_bytes) sized per TPU generation."""
    cap = 64 * 1024 * 1024
    try:
        cap = int(getattr(pltpu.get_tpu_info(), "vmem_capacity_bytes", cap))
    except Exception:
        pass  # best-effort detection; fall back to the conservative budget
    if cap >= 100 * 1024 * 1024:                      # v5e / v6e: 128 MiB VMEM
        return 8 * 1024 * 1024, 64 * 1024 * 1024
    return 3 * 1024 * 1024, 40 * 1024 * 1024          # v7x: 64 MiB / TensorCore


def _pick_batch_block(n, per_image_bytes, target_bytes):
    """Images per grid step: fill ~target_bytes, but keep >= 2 (ideally >= 4)
    grid blocks so the DMA pipeline overlaps and v7x megacore has work."""
    nb = max(1, min(n, target_bytes // max(per_image_bytes, 1)))
    if n >= 2:
        nb = min(nb, max(1, n // 4))
    return int(nb)


def std_loss(x):
    """Pallas TPU StdLoss forward.  x: (N, C, H, W) float array.

    Returns the float32 scalar MSE(conv2d(gray, delta5x5), conv2d(gray, box5x5/25)).
    """
    n, c, h, w = x.shape
    if h < KSIZE or w < KSIZE:
        raise ValueError(f"StdLoss requires spatial dims >= {KSIZE}, got {(h, w)}")
    ho, wo = h - (KSIZE - 1), w - (KSIZE - 1)

    target_bytes, vmem_limit = _vmem_budget()
    per_image_bytes = c * h * w * x.dtype.itemsize
    nb = _pick_batch_block(n, per_image_bytes, target_bytes)
    num_blocks = pl.cdiv(n, nb)

    # Roll-based taps only where planes are exactly lane/sublane aligned.
    use_rolls = (w % 128 == 0) and (h % 8 == 0)

    kernel = _make_std_loss_kernel(n, nb, c, use_rolls)

    partials = pl.pallas_call(
        kernel,
        out_shape=jax.ShapeDtypeStruct((num_blocks, 1, 1), jnp.float32),
        grid_spec=pltpu.PrefetchScalarGridSpec(
            num_scalar_prefetch=0,
            grid=(num_blocks,),
            in_specs=[pl.BlockSpec((nb, c, h, w), lambda b: (b, 0, 0, 0))],
            out_specs=pl.BlockSpec((1, 1, 1), lambda b: (b, 0, 0)),
        ),
        compiler_params=pltpu.CompilerParams(
            # Independent per-block partial sums -> shardable across both
            # TensorCores on v7x; harmless on single-TC v5e/v6e.
            dimension_semantics=("parallel",),
            vmem_limit_bytes=vmem_limit,
        ),
    )(x)

    # gray was the channel *sum* (= C * mean), so each squared term carries a
    # C^2 factor; MSE averages over the N * Ho * Wo conv outputs.
    # Loss is always returned in float32 (matches the framework reference).
    denom = jnp.float32(n * ho * wo) * jnp.float32(c * c)
    return jnp.sum(partials) / denom


def _reference_std_loss(x):
    """Pure-JAX reference of the PyTorch StdLoss forward, for verification."""
    blur_w = jnp.full((1, 1, KSIZE, KSIZE), 1.0 / 25.0, dtype=jnp.float32)
    img_w = jnp.zeros((1, 1, KSIZE, KSIZE), dtype=jnp.float32).at[0, 0, 2, 2].set(1.0)
    gray = jnp.mean(x.astype(jnp.float32), axis=1, keepdims=True)  # (N,1,H,W)
    conv_img = jax.lax.conv_general_dilated(
        gray, img_w, (1, 1), "VALID", dimension_numbers=("NCHW", "OIHW", "NCHW"))
    conv_blur = jax.lax.conv_general_dilated(
        gray, blur_w, (1, 1), "VALID", dimension_numbers=("NCHW", "OIHW", "NCHW"))
    return jnp.mean((conv_img - conv_blur) ** 2)


if __name__ == "__main__":
    # Deterministic small input, NCHW (batch=2, channels=4, spatial=16).
    key = jax.random.PRNGKey(0)
    x = jax.random.uniform(key, (2, 4, 16, 16), dtype=jnp.float32)

    loss = jax.block_until_ready(std_loss(x))
    ref = jax.block_until_ready(_reference_std_loss(x))
    assert jnp.allclose(loss, ref, rtol=1e-5, atol=1e-6), (loss, ref)

    print("KERNEL_OK")
</pallas_src>

<mosaic_0001>
module attributes {stable_mosaic.version = 11 : i64} {
  func.func @kernel(%arg0: i32, %arg1: memref<1x4x16x16xf32, #tpu.memory_space<vmem>>, %arg2: memref<1x1x1xf32, #tpu.memory_space<vmem>>) attributes {dimension_semantics = [#tpu.dimension_semantics<parallel>], iteration_bounds = array<i64: 2>, scalar_prefetch = 0 : i64, scratch_operands = 0 : i64, tpu.core_type = #tpu.core_type<tc>, window_params = [{transform_indices = @transform_0, window_bounds = array<i64: 1, 4, 16, 16>}, {transform_indices = @transform_1, window_bounds = array<i64: 1, 1, 1>}]} {
    %c0 = arith.constant 0 : index
    %c0_0 = arith.constant 0 : index
    %c0_1 = arith.constant 0 : index
    %c0_2 = arith.constant 0 : index
    %0 = vector.load %arg1[%c0, %c0_0, %c0_1, %c0_2] : memref<1x4x16x16xf32, #tpu.memory_space<vmem>>, vector<1x1x16x16xf32>
    %1 = vector.shape_cast %0 : vector<1x1x16x16xf32> to vector<1x16x16xf32>
    %c0_3 = arith.constant 0 : index
    %c1 = arith.constant 1 : index
    %c0_4 = arith.constant 0 : index
    %c0_5 = arith.constant 0 : index
    %2 = vector.load %arg1[%c0_3, %c1, %c0_4, %c0_5] : memref<1x4x16x16xf32, #tpu.memory_space<vmem>>, vector<1x1x16x16xf32>
    %3 = vector.shape_cast %2 : vector<1x1x16x16xf32> to vector<1x16x16xf32>
    %4 = arith.addf %1, %3 : vector<1x16x16xf32>
    %c0_6 = arith.constant 0 : index
    %c2 = arith.constant 2 : index
    %c0_7 = arith.constant 0 : index
    %c0_8 = arith.constant 0 : index
    %5 = vector.load %arg1[%c0_6, %c2, %c0_7, %c0_8] : memref<1x4x16x16xf32, #tpu.memory_space<vmem>>, vector<1x1x16x16xf32>
    %6 = vector.shape_cast %5 : vector<1x1x16x16xf32> to vector<1x16x16xf32>
    %7 = arith.addf %4, %6 : vector<1x16x16xf32>
    %c0_9 = arith.constant 0 : index
    %c3 = arith.constant 3 : index
    %c0_10 = arith.constant 0 : index
    %c0_11 = arith.constant 0 : index
    %8 = vector.load %arg1[%c0_9, %c3, %c0_10, %c0_11] : memref<1x4x16x16xf32, #tpu.memory_space<vmem>>, vector<1x1x16x16xf32>
    %9 = vector.shape_cast %8 : vector<1x1x16x16xf32> to vector<1x16x16xf32>
    %10 = arith.addf %7, %9 : vector<1x16x16xf32>
    %11 = vector.extract_strided_slice %10 {offsets = [0, 0, 0], sizes = [1, 16, 12], strides = [1, 1, 1]} : vector<1x16x16xf32> to vector<1x16x12xf32>
    %12 = vector.extract_strided_slice %10 {offsets = [0, 0, 1], sizes = [1, 16, 12], strides = [1, 1, 1]} : vector<1x16x16xf32> to vector<1x16x12xf32>
    %13 = arith.addf %11, %12 : vector<1x16x12xf32>
    %14 = vector.extract_strided_slice %10 {offsets = [0, 0, 2], sizes = [1, 16, 12], strides = [1, 1, 1]} : vector<1x16x16xf32> to vector<1x16x12xf32>
    %15 = arith.addf %13, %14 : vector<1x16x12xf32>
    %16 = vector.extract_strided_slice %10 {offsets = [0, 0, 3], sizes = [1, 16, 12], strides = [1, 1, 1]} : vector<1x16x16xf32> to vector<1x16x12xf32>
    %17 = arith.addf %15, %16 : vector<1x16x12xf32>
    %18 = vector.extract_strided_slice %10 {offsets = [0, 0, 4], sizes = [1, 16, 12], strides = [1, 1, 1]} : vector<1x16x16xf32> to vector<1x16x12xf32>
    %19 = arith.addf %17, %18 : vector<1x16x12xf32>
    %20 = vector.extract_strided_slice %19 {offsets = [0, 0, 0], sizes = [1, 12, 12], strides = [1, 1, 1]} : vector<1x16x12xf32> to vector<1x12x12xf32>
    %21 = vector.extract_strided_slice %19 {offsets = [0, 1, 0], sizes = [1, 12, 12], strides = [1, 1, 1]} : vector<1x16x12xf32> to vector<1x12x12xf32>
    %22 = arith.addf %20, %21 : vector<1x12x12xf32>
    %23 = vector.extract_strided_slice %19 {offsets = [0, 2, 0], sizes = [1, 12, 12], strides = [1, 1, 1]} : vector<1x16x12xf32> to vector<1x12x12xf32>
    %24 = arith.addf %22, %23 : vector<1x12x12xf32>
    %25 = vector.extract_strided_slice %19 {offsets = [0, 3, 0], sizes = [1, 12, 12], strides = [1, 1, 1]} : vector<1x16x12xf32> to vector<1x12x12xf32>
    %26 = arith.addf %24, %25 : vector<1x12x12xf32>
    %27 = vector.extract_strided_slice %19 {offsets = [0, 4, 0], sizes = [1, 12, 12], strides = [1, 1, 1]} : vector<1x16x12xf32> to vector<1x12x12xf32>
    %28 = arith.addf %26, %27 : vector<1x12x12xf32>
    %29 = vector.extract_strided_slice %10 {offsets = [0, 2, 2], sizes = [1, 12, 12], strides = [1, 1, 1]} : vector<1x16x16xf32> to vector<1x12x12xf32>
    %cst = arith.constant 4.000000e-02 : f32
    %30 = vector.broadcast %cst : f32 to vector<1x12x12xf32>
    %31 = arith.mulf %30, %28 : vector<1x12x12xf32>
    %32 = arith.subf %29, %31 : vector<1x12x12xf32>
    %33 = arith.mulf %32, %32 : vector<1x12x12xf32>
    %cst_12 = arith.constant dense<0.000000e+00> : vector<12xf32>
    %34 = vector.multi_reduction <add>, %33, %cst_12 [0, 1] : vector<1x12x12xf32> to vector<12xf32>
    %35 = vector.shape_cast %34 : vector<12xf32> to vector<1x12xf32>
    %cst_13 = arith.constant dense<0.000000e+00> : vector<1xf32>
    %36 = vector.multi_reduction <add>, %35, %cst_13 [1] : vector<1x12xf32> to vector<1xf32>
    %37 = vector.shape_cast %36 : vector<1xf32> to vector<1x1xf32>
    %38 = vector.extract %37[0, 0] : f32 from vector<1x1xf32>
    %39 = vector.broadcast %38 : f32 to vector<1x1x1xf32>
    %c0_14 = arith.constant 0 : index
    %c0_15 = arith.constant 0 : index
    %c0_16 = arith.constant 0 : index
    %40 = vector.load %arg2[%c0_14, %c0_15, %c0_16] : memref<1x1x1xf32, #tpu.memory_space<vmem>>, vector<1x1x1xf32>
    tpu.vector_store %arg2[%c0_14, %c0_15, %c0_16], %39 {strides = array<i32>} : memref<1x1x1xf32, #tpu.memory_space<vmem>>, vector<1x1x1xf32>,
    return
  }
  func.func @transform_0(%arg0: i32) -> (i32, i32, i32, i32) {
    %c0_i32 = arith.constant 0 : i32
    %c0_i32_0 = arith.constant 0 : i32
    %c0_i32_1 = arith.constant 0 : i32
    %c0_i32_2 = arith.constant 0 : i32
    return %arg0, %c0_i32, %c0_i32_0, %c0_i32_1 : i32, i32, i32, i32
  }
  func.func @transform_1(%arg0: i32) -> (i32, i32, i32) {
    %c0_i32 = arith.constant 0 : i32
    %c0_i32_0 = arith.constant 0 : i32
    %c0_i32_1 = arith.constant 0 : i32
    return %arg0, %c0_i32, %c0_i32_0 : i32, i32, i32
  }
}

</mosaic_0001>

<bundles_post_ra>
// kernel: tpu_custom_call.1
= control target key start
LH: loop header
LB: loop body
LE: loop exit
PB: predicated region body
PF: predicated region fallthrough
CT: control target
= control target key end

     0   :  { %6 = vsyncpa [#allocation3], 0  ;;  %s580_s0 = inlined_call_operand.hbm [shape: f32[2,4,16,16], index: 0, kind: input, shape index: {}]   ;;  %s581_s1 = inlined_call_operand.vmem [shape: f32[2,1,1], index: 1, kind: output, shape index: {}]  }
   0x1   :  { %8 = vsyncpa [#allocation3 + $0x1], 0  ;;  %s475_s6 = smov 0   ;;  %s477_s7 = smov 0  }
   0x2   :  { %s479_s8 = smov 0   ;;  %s481_s9 = smov 0  }
   0x3 LB: > { %s494_s10 = sadd.s32 4294967295, %s456_s9   ;;  %s497_s11 = sadd.s32 1, %s456_s9   ;;  %s456_s9 = sphi %s481_s9, %s588_s9   ;;  %s452_s8 = sphi %s479_s8, %s587_s8   ;;  %s448_s7 = sphi %s477_s7, %s586_s7   ;;  %s444_s6 = sphi %s475_s6, %s585_s6  }
   0x4   : > { %s18_s12 = ssub.s32 %s456_s9, %s497_s11  ;;  %s21_s13 = sadd.s32 1, %s452_s8 }
   0x5   : > { %p19_p0 = scmp.eq.s32.totalorder %s18_s12, 0  ;;  %p28_p1 = scmp.ne.s32.totalorder %s452_s8, %s448_s7 }
   0x6   : > { %p29_p2 = scmp.eq.s32.totalorder %s456_s9, 0  ;;  %p34_p3 = scmp.ne.s32.totalorder %s448_s7, %s444_s6 }
   0x7   : > { %s507_s14 = scalar_select %p19_p0, %s452_s8, %s21_s13  }
   0x8   : > { %p509_p4 = por %p29_p2, %p28_p1  ;;  %p35_p5 = scmp.eq.s32.totalorder %s494_s10, 0 }
   0x9   : > { %p352_p6 = scmp.lt.s32.totalorder %s456_s9, 2  ;;  %s84_s17 = sand.u32 1, %s452_s8  }
   0xa   : > { %p515_p7 = por %p35_p5, %p34_p3  ;;  %s330_s18 = sshll.u32 %s84_s17, 6 }
   0xb   : > { %s343_s19 = sshll.u32 %s456_s9, 6  ;;  %s88_s23 = scalar_lea.vmem [#allocation2], %s330_s18 }
   0xc   : > { %s93_s22 = scalar_lea.hbm %s580_s0, %s343_s19  ;;  %s96_s24 = sshll.u32 %s88_s23, 4  ;;  %s97_s24 = int_to_ptr.vmem [resolvable:$true] %s96_s24 }
   0xd   : > { %s94_s25 = sshll.u32 %s93_s22, 4  ;;  %p526_p8 = pnand %p352_p6, %p509_p4  ;;  %s95_s25 = int_to_ptr.hbm [resolvable:$true] %s94_s25 }
   0xe   : > { %p333_p9 = scmp.ge.s32.totalorder %s456_s9, 1  ;;  %s85_s27 = scalar_lea.sflag [#allocation3], %s84_s17 }
   0xf   : > { %s392_s28 = sshra.s32 %s95_s25, 4  ;;  %p396_p11 = pneg %p526_p8  ;;  %s393_s28 = int_to_ptr.hbm [resolvable:$true] %s392_s28 }
  0x10   : > { %s394_s29 = scalar_lea.hbm %s393_s28, 64  ;;  %s399_s3 = scalar_lea.hbm %s580_s0, 128 }
  0x11   : > { %p395_p10 = scmp.ne.s32.totalorder %s393_s28, %s394_s29  ;;  %p400_p0 = scmp.lt.s32.totalorder %s393_s28, %s580_s0 }
  0x12   : > { %p401_p1 = scmp.lt.s32.totalorder %s399_s3, %s394_s29 }
  0x13   : > { %p397_p12 = pnand %p396_p11, %p395_p10 }
  0x14   : > { %p402_p2 = por %p401_p1, %p400_p0 }
  0x15   : > { %p398_p13 = pneg %p397_p12 }
  0x17   : > { %p403_p3 = pnand %p402_p2, %p398_p13 }
  0x19   : > { %406 = shalt.err (!%p403_p3)
}
  0x1a   : > { %s458_s6 = smov 128   ;;  %s459_s12 = smov 8  }
  0x1b   : > { %351 = dma.hbm_to_vmem [thread:$0]  (!%p526_p8), %s95_s25, 1024, %s97_s24, %s85_s27, %s458_s6, %s458_s6, %s459_s12  }
  0x1c   : > { %p104_p4 = scmp.lt.s32.totalorder %s456_s9, 3 }
  0x1e   : > { %p105_p5 = pnand %p333_p9, %p104_p4 }
  0x1f   : > { %s110_s13 = sand.u32 (!%p105_p5), 1, %s448_s7  }
  0x20   : > { %108 = sbr.rel (%p105_p5) target bundleno = 615 (0x267), region = 24  ;;  %s334_s15 = sshll.u32 (!%p105_p5), %s110_s13, 6 }
  0x21   : > { %s111_s17 = scalar_lea.sflag (!%p105_p5), [#allocation3], %s110_s13  ;;  %s114_s18 = scalar_lea.vmem (!%p105_p5), [#allocation2], %s334_s15 }
  0x25   : > { %439 = dma.done.wait (%p515_p7), %s111_s17, 1024  }
  0x26   : > { %441 = vsyncadd (%p515_p7), %s111_s17, 4294966272  ;;  %v135_v0 = vld [vmem:[%s114_s18] sm:$0xff]  ;;  %v335_v1 = vld [vmem:[%s114_s18 + $0x10] sm:$0xff]  ;;  %s460_s9 = smov 126   ;;  %s461_s19 = smov 127   ;;  %vm188_vm0 = vcmask 1046528  }
  0x27   : > { %v337_v2 = vld [vmem:[%s114_s18 + $0x20] sm:$0xff]  ;;  %v140_v3 = vadd.f32 %v335_v1, %v135_v0  ;;  %v136_v4 = vld [vmem:[%s114_s18 + $0x8] sm:$0xff]  ;;  %v336_v5 = vld [vmem:[%s114_s18 + $0x18] sm:$0xff]  ;;  %s462_s16 = smov 125   ;;  %s463_s20 = smov 124   ;;  %vm196_vm1 = vcmask 1045504  }
  0x28   : > { %v339_v6 = vld [vmem:[%s114_s18 + $0x30] sm:$0xff]  ;;  %v141_v8 = vadd.f32 %v336_v5, %v136_v4  ;;  %v338_v9 = vld [vmem:[%s114_s18 + $0x28] sm:$0xff]  ;;  %v340_v12 = vld [vmem:[%s114_s18 + $0x38] sm:$0xff]  ;;  %vm204_vm2 = vcmask 1044480   ;;  %vm212_vm3 = vcmask 1043456   ;;  %vm224_vm4 = vcmask 1041408  }
  0x29   : > { %v145_v7 = vadd.f32 %v337_v2, %v140_v3  ;;  %s464_s21 = smov 2   ;;  %vm247_vm5 = vcmask 109584   ;;  %vm245_vm6 = vcmask 113680   ;;  %vm260_vm7 = vcmask 97280   ;;  %p132_p6 = scmp.lt.s32.totalorder %s494_s10, 1 }
  0x2a   : > { %v146_v11 = vadd.f32 %v338_v9, %v141_v8  ;;  %vm266_vm8 = vcmask 0  }
  0x2b   : > { %v549_v10 = vadd.f32 %v339_v6, %v145_v7  ;;  %s590_s10 = smov (!%p132_p6, %s494_s10), 1 }
  0x2c   : > { %v151_v13 = vadd.f32 %v340_v12, %v146_v11  ;;  %s134_s24 = scalar_lea.vmem %s581_s1, %s590_s10 }
  0x2d   : > { %162 = vrot.lane.b32.xlu1 %v549_v10, %s460_s9  ;;  %154 = vrot.lane.b32.xlu0 %v549_v10, %s461_s19 }
  0x2e   : > { %170 = vrot.lane.b32.xlu2 %v549_v10, %s462_s16 }
  0x35   : > { %164 = vrot.lane.b32.xlu1 %v151_v13, %s460_s9  ;;  %156 = vrot.lane.b32.xlu0 %v151_v13, %s461_s19 }
  0x36   : > { %172 = vrot.lane.b32.xlu2 %v151_v13, %s462_s16 }
  0x3d   : > { %180 = vrot.lane.b32.xlu1 %v151_v13, %s463_s20  ;;  %178 = vrot.lane.b32.xlu0 %v549_v10, %s463_s20 }
  0x88   : > { %v171_v16 = vpop.permute.xlu2 %170 }
  0x90   : > { %v173_v23 = vpop.permute.xlu2 %172 }
  0x9f   : > { %v163_v14 = vpop.permute.xlu1 %162  ;;  %v155_v15 = vpop.permute.xlu0 %154 }
  0xa0   : > { %v160_v17 = vadd.f32 %v155_v15, %v549_v10 }
  0xa2   : > { %v168_v21 = vadd.f32 %v163_v14, %v160_v17 }
  0xa4   : > { %v176_v24 = vadd.f32 %v171_v16, %v168_v21 }
  0xa7   : > { %v165_v18 = vpop.permute.xlu1 %164  ;;  %v157_v19 = vpop.permute.xlu0 %156 }
  0xa8   : > { %v161_v20 = vadd.f32 %v157_v19, %v151_v13 }
  0xaa   : > { %v169_v22 = vadd.f32 %v165_v18, %v161_v20 }
  0xac   : > { %v177_v25 = vadd.f32 %v173_v23, %v169_v22 }
  0xaf   : > { %v181_v26 = vpop.permute.xlu1 %180  ;;  %v179_v27 = vpop.permute.xlu0 %178 }
  0xb0   : > { %v185_v28 = vadd.f32 %v181_v26, %v177_v25  ;;  %v184_v29 = vadd.f32 %v179_v27, %v176_v24 }
  0xb2   : > { %v190_v30 = vrot.slane %v185_v28, 1  ;;  %v198_v31 = vrot.slane %v185_v28, 2  ;;  %v189_v32 = vrot.slane %v184_v29, 1  ;;  %v197_v33 = vrot.slane %v184_v29, 2 }
  0xb3   : > { %v205_v36 = vrot.slane %v184_v29, 3  ;;  %v206_v37 = vrot.slane %v185_v28, 3  ;;  %v213_v40 = vrot.slane %v184_v29, 4  ;;  %v214_v41 = vrot.slane %v185_v28, 4 }
  0xb4   : > { %v195_v34 = vadd.f32 %v190_v30, %v185_v28  ;;  %v191_v35 = vsel %vm188_vm0, %v189_v32, %v190_v30  ;;  %v199_v39 = vsel %vm196_vm1, %v197_v33, %v198_v31 }
  0xb5   : > { %v194_v38 = vadd.f32 %v191_v35, %v184_v29  ;;  %v207_v44 = vsel %vm204_vm2, %v205_v36, %v206_v37  ;;  %v215_v47 = vsel %vm212_vm3, %v213_v40, %v214_v41 }
  0xb6   : > { %v203_v42 = vadd.f32 %v198_v31, %v195_v34 }
  0xb7   : > { %v202_v43 = vadd.f32 %v199_v39, %v194_v38 }
  0xb8   : > { %v211_v45 = vadd.f32 %v206_v37, %v203_v42 }
  0xb9   : > { %v210_v46 = vadd.f32 %v207_v44, %v202_v43 }
  0xba   : > { %v219_v48 = vadd.f32 %v214_v41, %v211_v45 }
  0xbb   : > { %v218_v49 = vadd.f32 %v215_v47, %v210_v46 }
  0xbc   : > { %v221_v50 = vmul.f32 0.04, %v219_v48 }
  0xbd   : > { %v220_v51 = vmul.f32 0.04, %v218_v49 }
  0xbe   : > { %v226_v52 = vrot.slane %v221_v50, 6 }
  0xbf   : > { %v225_v53 = vrot.slane %v220_v51, 6 }
  0xc1   : > { %228 = vrot.lane.b32.xlu2 %v225_v53, %s464_s21  ;;  %v227_v54 = vsel %vm224_vm4, %v225_v53, %v226_v52 }
  0xc2   : > { %230 = vrot.lane.b32.xlu0 %v227_v54, %s464_s21 }
 0x11b   : > { %v229_v55 = vpop.permute.xlu2 %228 }
 0x11c   : > { %v234_v56 = vsub.f32 %v549_v10, %v229_v55 }
 0x11e   : > { %v236_v58 = vmul.f32 %v234_v56, %v234_v56 }
 0x120   : > { %v240_v61 = vrot.slane %v236_v58, 2 }
 0x134   : > { %v231_v57 = vpop.permute.xlu0 %230 }
 0x135   : > { %v235_v59 = vsub.f32 %v151_v13, %v231_v57 }
 0x137   : > { %v237_v60 = vmul.f32 %v235_v59, %v235_v59 }
 0x139   : > { %v241_v62 = vrot.slane %v237_v60, 2 }
 0x13b   : > { %v242_v63 = vsel %vm196_vm1, %v240_v61, %v241_v62  ;;  %v248_v0 = vsel %vm247_vm5, %v241_v62, 0.0 }
 0x13c   : > { %v246_v1 = vsel %vm245_vm6, %v242_v63, 0.0 }
 0x13d   : > { %v249_v2 = vadd.f32 %v248_v0, %v246_v1 }
 0x13f   : > { %v250_v3 = vrot.slane %v249_v2, 4 }
 0x141   : > { %v251_v4 = vadd.f32 %v250_v3, %v249_v2 }
 0x143   : > { %v252_v5 = vrot.slane %v251_v4, 2 }
 0x145   : > { %v253_v6 = vadd.f32 %v252_v5, %v251_v4 }
 0x147   : > { %v254_v7 = vrot.slane %v253_v6, 1 }
 0x149   : > { %v255_v8 = vadd.f32 %v254_v7, %v253_v6 }
 0x14b   : > { %257 = vrot.lane.b32.xlu1 %v255_v8, %s460_s9 }
 0x1bd   : > { %v258_v9 = vpop.permute.xlu1 %257 }
 0x1be   : > { %v261_v10 = vsel %vm260_vm7, %v258_v9, 0.0 }
 0x1bf   : > { %262 = vadd.xlane.f32.xlu2 %v261_v10 }
 0x232   : > { %v263_v11 = vpop.xlane.xlu2 %262 }
 0x233   : > { %344 = vpush %v263_v11 }
 0x264   : > { %s345_s25 = spop %344 }
 0x265   : > { %v265_v12 = vstv %s345_s25 }
 0x266   : > { %267 = vst.msk [vmem:[%s134_s24] sm:$0x1] %vm266_vm8, %v265_v12 }
 0x267 PF: > { %p11_p7 = scmp.ge.s32.totalorder %s497_s11, 4   ;;  %s585_s6 = smov %s448_s7 }
 0x268   : > { %s586_s7 = smov %s452_s8  ;;  %s587_s8 = smov %s507_s14 }
 0x269   : > { %s588_s9 = smov %s497_s11  ;;  %13 = sbr.rel (!%p11_p7) target bundleno = 3 (0x3), region = 67 }
 0x26e   :  { %285 = vsyncpa [#allocation3], 1 }
 0x26f   :  { %287 = vsyncpa [#allocation3 + $0x1], 1 }

</bundles_post_ra>
